<compile_context>
chip_gen: v7x
topology: tpu7x:2x2x1
jax: 0.10.0
libtpu: 0.0.40
codegen_flags: <defaults>
</compile_context>

<pallas_src>
import functools

import jax
import jax.numpy as jnp
from jax.experimental import pallas as pl
from jax.experimental.pallas import tpu as pltpu


LANE = 128            # TPU lane width: pad every layer output dim up to this
MAX_BATCH_TILE = 512  # rows of activation per grid step for large batches


def _round_up(n: int, m: int) -> int:
    return ((n + m - 1) // m) * m


# ----------------------------------------------------------------------------
# Fused kernel: h = x ; for each layer: h = (h @ W_i + b_i) [ReLU except last]
# ----------------------------------------------------------------------------
def _fused_mlp_kernel(x_ref, *rest, n_layers: int, compute_dtype):
    """rest = (w_0, b_0, w_1, b_1, ..., w_{L-1}, b_{L-1}, o_ref)."""
    o_ref = rest[-1]
    h = x_ref[...].astype(compute_dtype)                    # [TB, IN]
    for i in range(n_layers):
        w = rest[2 * i][...]                                 # [IN_i, OUT_i] resident in VMEM
        b = rest[2 * i + 1][...]                             # [1, OUT_i]
        h = jnp.dot(h, w.astype(compute_dtype),
                    preferred_element_type=jnp.float32) + b.astype(jnp.float32)
        if i < n_layers - 1:
            h = jnp.maximum(h, 0.0)                          # ReLU between layers only
            h = h.astype(compute_dtype)
    o_ref[...] = h.astype(o_ref.dtype)                       # lane-dense [TB, 128k] store


# ----------------------------------------------------------------------------
# Wrapper: channel-0 select (no copy), lane padding, batch grid, pallas_call
# ----------------------------------------------------------------------------
def baseline_mlp_forward(params, x, *, compute_dtype=jnp.float32):
    """x: [B, C, H, W] float32 (NCHW, like PyTorch). Returns logits [B, 4].

    Set compute_dtype=jnp.bfloat16 to feed the MXU bf16 operands (f32 accum);
    default f32 keeps bit-level parity with the PyTorch module.
    """
    B, C, H, W = x.shape
    in_features = H * W
    n_layers = len(params)
    assert params[0][0].shape[0] == in_features, "layer-0 fan_in must equal H*W"

    # --- channel-0 select + flatten ------------------------------------------
    if in_features % LANE == 0:
        # Row-major [B, C, H, W] -> [B, C*H*W] is a free contiguous reshape.
        # Channel 0 (flattened) is exactly columns [0, H*W), i.e. block-column 0
        # of a width-(H*W) blocking, so the Pallas DMA reads only 1/C of x.
        x2 = x.reshape(B, C * H * W)
    else:
        # Fallback when H*W is not lane-aligned: slice channel 0 in XLA.
        x2 = x[:, 0, :, :].reshape(B, in_features)
    x2 = x2.astype(jnp.float32)

    # --- zero-pad every layer to lane-dense widths (semantics preserved) -----
    # ReLU(0)=0 and padded weight rows/cols are zero, so padded activation
    # columns stay zero through the whole network; only [:, :out_true] of the
    # final result is meaningful.
    out_true = params[-1][0].shape[1]                        # 4
    layers = []
    prev_width = in_features                                 # kernel-visible input width
    for (w, b) in params:
        fan_in, fan_out = w.shape
        out_pad = _round_up(fan_out, LANE)
        w_p = jnp.zeros((prev_width, out_pad), w.dtype).at[:fan_in, :fan_out].set(w)
        b_p = jnp.zeros((1, out_pad), b.dtype).at[0, :fan_out].set(b)
        layers.append((w_p, b_p))
        prev_width = out_pad
    out_pad = prev_width                                     # padded final width (>=128)

    # --- batch grid -----------------------------------------------------------
    TB = B if B <= MAX_BATCH_TILE else MAX_BATCH_TILE
    grid = (pl.cdiv(B, TB),)

    in_specs = [pl.BlockSpec((TB, in_features), lambda i: (i, 0))]   # activation tile
    flat_wb = []
    for w_p, b_p in layers:
        in_specs.append(pl.BlockSpec(w_p.shape, lambda i: (0, 0)))   # resident weight
        in_specs.append(pl.BlockSpec(b_p.shape, lambda i: (0, 0)))   # resident bias
        flat_wb.extend([w_p, b_p])

    kernel = functools.partial(_fused_mlp_kernel,
                               n_layers=n_layers, compute_dtype=compute_dtype)

    out_padded = pl.pallas_call(
        kernel,
        out_shape=jax.ShapeDtypeStruct((B, out_pad), jnp.float32),
        grid=grid,
        in_specs=in_specs,
        out_specs=pl.BlockSpec((TB, out_pad), lambda i: (i, 0)),
        compiler_params=pltpu.CompilerParams(
            dimension_semantics=("parallel",)),
    )(x2, *flat_wb)

    return out_padded[:, :out_true]


# ----------------------------------------------------------------------------
# Parameter construction (mimics torch.nn.Linear default init) and reference
# ----------------------------------------------------------------------------
def init_baseline_mlp_params(key, input_size: int, hidden):
    """Weights stored as [in_features, out_features] so the hot path is x @ W + b."""
    dims = [input_size] + list(hidden) + [4]       # out_size = 4
    params = []
    for i in range(len(dims) - 1):
        fan_in, fan_out = dims[i], dims[i + 1]
        key, kw, kb = jax.random.split(key, 3)
        bound = 1.0 / jnp.sqrt(jnp.float32(fan_in))
        w = jax.random.uniform(kw, (fan_in, fan_out), jnp.float32, -bound, bound)
        b = jax.random.uniform(kb, (fan_out,), jnp.float32, -bound, bound)
        params.append((w, b))
    return params


def baseline_mlp_reference(params, x):
    h = x[:, 0, :, :].reshape(x.shape[0], -1).astype(jnp.float32)
    n_layers = len(params)
    for i, (w, b) in enumerate(params):
        h = h @ w + b
        if i < n_layers - 1:
            h = jnp.maximum(h, 0.0)
    return h


if __name__ == "__main__":
    key = jax.random.PRNGKey(0)
    k_in, k_p1, k_p2 = jax.random.split(key, 3)

    # Small shapes consistent with the module: B=2, C=4, H=W=16 -> input_size=256.
    B, C, H, W = 2, 4, 16, 16
    input_size = H * W

    fwd = jax.jit(baseline_mlp_forward)

    # Main check: single hidden layer of 32 (as the module's hidden=[32]).
    x = jax.random.normal(k_in, (B, C, H, W), dtype=jnp.float32)
    params = init_baseline_mlp_params(k_p1, input_size, [32])
    logits = jax.block_until_ready(fwd(params, x))
    ref = baseline_mlp_reference(params, x)
    assert logits.shape == (B, 4), logits.shape
    assert jnp.allclose(logits, ref, atol=1e-5, rtol=1e-5), (logits, ref)

    # Secondary check: two hidden layers exercise hidden-dim lane padding.
    params2 = init_baseline_mlp_params(k_p2, input_size, [32, 48])
    logits2 = jax.block_until_ready(fwd(params2, x))
    ref2 = baseline_mlp_reference(params2, x)
    assert jnp.allclose(logits2, ref2, atol=1e-5, rtol=1e-5), (logits2, ref2)

    print("KERNEL_OK")
</pallas_src>

<mosaic_0001>
module attributes {stable_mosaic.version = 11 : i64} {
  func.func @_fused_mlp_kernel(%arg0: i32, %arg1: memref<2x256xf32, #tpu.memory_space<vmem>>, %arg2: memref<256x128xf32, #tpu.memory_space<vmem>>, %arg3: memref<1x128xf32, #tpu.memory_space<vmem>>, %arg4: memref<128x128xf32, #tpu.memory_space<vmem>>, %arg5: memref<1x128xf32, #tpu.memory_space<vmem>>, %arg6: memref<2x128xf32, #tpu.memory_space<vmem>>) attributes {dimension_semantics = [#tpu.dimension_semantics<parallel>], iteration_bounds = array<i64: 1>, scalar_prefetch = 0 : i64, scratch_operands = 0 : i64, tpu.core_type = #tpu.core_type<tc>, window_params = [{transform_indices = @transform_0, window_bounds = array<i64: 2, 256>}, {pipeline_mode = #tpu.pipeline_mode<synchronous>, transform_indices = @transform_1, window_bounds = array<i64: 256, 128>}, {pipeline_mode = #tpu.pipeline_mode<synchronous>, transform_indices = @transform_2, window_bounds = array<i64: 1, 128>}, {pipeline_mode = #tpu.pipeline_mode<synchronous>, transform_indices = @transform_3, window_bounds = array<i64: 128, 128>}, {pipeline_mode = #tpu.pipeline_mode<synchronous>, transform_indices = @transform_4, window_bounds = array<i64: 1, 128>}, {transform_indices = @transform_5, window_bounds = array<i64: 2, 128>}]} {
    %c0 = arith.constant 0 : index
    %c0_0 = arith.constant 0 : index
    %0 = vector.load %arg1[%c0, %c0_0] : memref<2x256xf32, #tpu.memory_space<vmem>>, vector<2x256xf32>
    %c0_1 = arith.constant 0 : index
    %c0_2 = arith.constant 0 : index
    %1 = vector.load %arg2[%c0_1, %c0_2] : memref<256x128xf32, #tpu.memory_space<vmem>>, vector<256x128xf32>
    %c0_3 = arith.constant 0 : index
    %c0_4 = arith.constant 0 : index
    %2 = vector.load %arg3[%c0_3, %c0_4] : memref<1x128xf32, #tpu.memory_space<vmem>>, vector<1x128xf32>
    %cst = arith.constant dense<0.000000e+00> : vector<2x128xf32>
    %3 = tpu.matmul %0, %1, %cst {dimension_numbers = #tpu.dot_dimension_numbers<[1], [0], [0], [1], [0, 0, 1, 1], [], []>} : vector<2x256xf32>, vector<256x128xf32>, vector<2x128xf32> -> vector<2x128xf32>
    %4 = vector.broadcast %2 : vector<1x128xf32> to vector<2x128xf32>
    %5 = arith.addf %3, %4 : vector<2x128xf32>
    %cst_5 = arith.constant 0.000000e+00 : f32
    %6 = vector.broadcast %cst_5 : f32 to vector<2x128xf32>
    %7 = arith.maximumf %5, %6 : vector<2x128xf32>
    %c0_6 = arith.constant 0 : index
    %c0_7 = arith.constant 0 : index
    %8 = vector.load %arg4[%c0_6, %c0_7] : memref<128x128xf32, #tpu.memory_space<vmem>>, vector<128x128xf32>
    %c0_8 = arith.constant 0 : index
    %c0_9 = arith.constant 0 : index
    %9 = vector.load %arg5[%c0_8, %c0_9] : memref<1x128xf32, #tpu.memory_space<vmem>>, vector<1x128xf32>
    %cst_10 = arith.constant dense<0.000000e+00> : vector<2x128xf32>
    %10 = tpu.matmul %7, %8, %cst_10 {dimension_numbers = #tpu.dot_dimension_numbers<[1], [0], [0], [1], [0, 0, 1, 1], [], []>} : vector<2x128xf32>, vector<128x128xf32>, vector<2x128xf32> -> vector<2x128xf32>
    %11 = vector.broadcast %9 : vector<1x128xf32> to vector<2x128xf32>
    %12 = arith.addf %10, %11 : vector<2x128xf32>
    %c0_11 = arith.constant 0 : index
    %c0_12 = arith.constant 0 : index
    %13 = vector.load %arg6[%c0_11, %c0_12] : memref<2x128xf32, #tpu.memory_space<vmem>>, vector<2x128xf32>
    tpu.vector_store %arg6[%c0_11, %c0_12], %12 {strides = array<i32>} : memref<2x128xf32, #tpu.memory_space<vmem>>, vector<2x128xf32>,
    return
  }
  func.func @transform_0(%arg0: i32) -> (i32, i32) {
    %c0_i32 = arith.constant 0 : i32
    %c0_i32_0 = arith.constant 0 : i32
    return %arg0, %c0_i32 : i32, i32
  }
  func.func @transform_1(%arg0: i32) -> (i32, i32) {
    %c0_i32 = arith.constant 0 : i32
    %c0_i32_0 = arith.constant 0 : i32
    %c0_i32_1 = arith.constant 0 : i32
    return %c0_i32, %c0_i32_0 : i32, i32
  }
  func.func @transform_2(%arg0: i32) -> (i32, i32) {
    %c0_i32 = arith.constant 0 : i32
    %c0_i32_0 = arith.constant 0 : i32
    %c0_i32_1 = arith.constant 0 : i32
    return %c0_i32, %c0_i32_0 : i32, i32
  }
  func.func @transform_3(%arg0: i32) -> (i32, i32) {
    %c0_i32 = arith.constant 0 : i32
    %c0_i32_0 = arith.constant 0 : i32
    %c0_i32_1 = arith.constant 0 : i32
    return %c0_i32, %c0_i32_0 : i32, i32
  }
  func.func @transform_4(%arg0: i32) -> (i32, i32) {
    %c0_i32 = arith.constant 0 : i32
    %c0_i32_0 = arith.constant 0 : i32
    %c0_i32_1 = arith.constant 0 : i32
    return %c0_i32, %c0_i32_0 : i32, i32
  }
  func.func @transform_5(%arg0: i32) -> (i32, i32) {
    %c0_i32 = arith.constant 0 : i32
    %c0_i32_0 = arith.constant 0 : i32
    return %arg0, %c0_i32 : i32, i32
  }
}

</mosaic_0001>

<bundles_post_ra>
// kernel: baseline_mlp_forward.1
= control target key start
LH: loop header
LB: loop body
LE: loop exit
PB: predicated region body
PF: predicated region fallthrough
CT: control target
= control target key end

     0   :  { %v425_v7 = vmov 0.0|0.0   ;;  %s637_s0 = inlined_call_operand.vmem [shape: f32[2,1024], index: 0, kind: input, shape index: {}]   ;;  %s638_s1 = inlined_call_operand.vmem [shape: f32[256,128], index: 1, kind: input, shape index: {}]   ;;  %s639_s2 = inlined_call_operand.vmem [shape: f32[1,128], index: 2, kind: input, shape index: {}]   ;;  %s640_s3 = inlined_call_operand.vmem [shape: f32[128,128], index: 3, kind: input, shape index: {}]   ;;  %s641_s4 = inlined_call_operand.vmem [shape: f32[1,128], index: 4, kind: input, shape index: {}]   ;;  %s642_s5 = inlined_call_operand.hbm [shape: f32[2,128], index: 5, kind: output, shape index: {}]  }
   0x1   :  { %v38_v0 = vld [vmem:[%s638_s1 + $0x80] sm:$0xff]  ;;  %v39_v1 = vld [vmem:[%s638_s1 + $0x88] sm:$0xff]  ;;  %v40_v5 = vld [vmem:[%s638_s1 + $0x90] sm:$0xff]  ;;  %373 = vmatprep.subr.bf16.mxu1 %v425_v7 }
   0x2   :  { %v22_v2 = vld [vmem:[%s638_s1] sm:$0xff]  ;;  %v341_v3 = vpack.c.bf16 %v39_v1, %v38_v0  ;;  %v23_v4 = vld [vmem:[%s638_s1 + $0x8] sm:$0xff]  ;;  %v41_v6 = vld [vmem:[%s638_s1 + $0x98] sm:$0xff] }
   0x3   :  { %v343_v8 = vpack.c.bf16 %v23_v4, %v22_v2  ;;  %v345_v9 = vpack.c.bf16 %v41_v6, %v40_v5  ;;  %v24_v10 = vld [vmem:[%s638_s1 + $0x10] sm:$0xff]  ;;  %v25_v11 = vld [vmem:[%s638_s1 + $0x18] sm:$0xff]  ;;  %v42_v12 = vld [vmem:[%s638_s1 + $0xa0] sm:$0xff] }
   0x4   :  { %342 = vmatprep.subr.bf16.mxu0 %v341_v3  ;;  %v43_v13 = vld [vmem:[%s638_s1 + $0xa8] sm:$0xff]  ;;  %v347_v14 = vpack.c.bf16 %v25_v11, %v24_v10  ;;  %v26_v16 = vld [vmem:[%s638_s1 + $0x20] sm:$0xff]  ;;  %v44_v18 = vld [vmem:[%s638_s1 + $0xb0] sm:$0xff] }
   0x5   :  { %344 = vmatpush3.bf16.msra.mxu0 %v343_v8  ;;  %v349_v15 = vpack.c.bf16 %v43_v13, %v42_v12  ;;  %v27_v17 = vld [vmem:[%s638_s1 + $0x28] sm:$0xff]  ;;  %v45_v19 = vld [vmem:[%s638_s1 + $0xb8] sm:$0xff]  ;;  %v28_v22 = vld [vmem:[%s638_s1 + $0x30] sm:$0xff] }
   0x6   :  { %346 = vmatprep.subr.bf16.mxu0 %v345_v9  ;;  %v351_v20 = vpack.c.bf16 %v27_v17, %v26_v16  ;;  %v353_v21 = vpack.c.bf16 %v45_v19, %v44_v18  ;;  %v29_v23 = vld [vmem:[%s638_s1 + $0x38] sm:$0xff]  ;;  %v46_v24 = vld [vmem:[%s638_s1 + $0xc0] sm:$0xff]  ;;  %v47_v25 = vld [vmem:[%s638_s1 + $0xc8] sm:$0xff] }
   0x7   :  { %v517_v26 = vld.sshfl [vmem:[%s637_s0] sm:$0x33 pattern:$0x76325410]  ;;  %v144_v29 = vld [vmem:[%s640_s3 + $0x8] sm:$0xff]  ;;  %v145_v30 = vld [vmem:[%s640_s3 + $0x10] sm:$0xff]  ;;  %v355_v31 = vpack.c.bf16 %v29_v23, %v28_v22  ;;  %v357_v34 = vpack.c.bf16 %v47_v25, %v46_v24 }
   0x8   :  { %v69_v27 = vcombine.high %v517_v26, %v517_v26  ;;  %v143_v28 = vld [vmem:[%s640_s3] sm:$0xff]  ;;  %v146_v33 = vld [vmem:[%s640_s3 + $0x18] sm:$0xff]  ;;  %v31_v36 = vld [vmem:[%s638_s1 + $0x48] sm:$0xff] }
   0x9   :  { %348 = vmatpush3.bf16.msra.mxu0 %v347_v14  ;;  %v374_v32 = vpack.c.bf16 %v144_v29, %v143_v28  ;;  %v30_v35 = vld [vmem:[%s638_s1 + $0x40] sm:$0xff]  ;;  %v48_v37 = vld [vmem:[%s638_s1 + $0xd0] sm:$0xff]  ;;  %v49_v38 = vld [vmem:[%s638_s1 + $0xd8] sm:$0xff]  ;;  %v377_v39 = vpack.c.bf16 %v146_v33, %v145_v30 }
   0xa   :  { %350 = vmatprep.subr.bf16.mxu0 %v349_v15  ;;  %136 = vmatprep.mubr.f32.mxu0 %v69_v27  ;;  %v147_v40 = vld [vmem:[%s640_s3 + $0x20] sm:$0xff]  ;;  %v148_v41 = vld [vmem:[%s640_s3 + $0x28] sm:$0xff] }
   0xb   :  { %375 = vmatpush3.bf16.msra.mxu1 %v374_v32 }
   0xc   :  { %376 = vmatprep.subr.bf16.mxu1 %v425_v7 }
   0xd   :  { %352 = vmatpush3.bf16.msra.mxu0 %v351_v20 }
   0xe   :  { %354 = vmatprep.subr.bf16.mxu0 %v353_v21 }
   0xf   :  { %10 = vsyncpa [#allocation3], 0  ;;  %v359_v42 = vpack.c.bf16 %v31_v36, %v30_v35  ;;  %v361_v43 = vpack.c.bf16 %v49_v38, %v48_v37  ;;  %v32_v44 = vld [vmem:[%s638_s1 + $0x50] sm:$0xff]  ;;  %v33_v45 = vld [vmem:[%s638_s1 + $0x58] sm:$0xff]  ;;  %378 = vmatpush3.bf16.msra.mxu1 %v377_v39  ;;  %v380_v48 = vpack.c.bf16 %v148_v41, %v147_v40  ;;  %vm426_vm0 = vmmov 0  }
  0x10   :  { %v50_v46 = vld [vmem:[%s638_s1 + $0xe0] sm:$0xff]  ;;  %v51_v47 = vld [vmem:[%s638_s1 + $0xe8] sm:$0xff]  ;;  %379 = vmatprep.subr.bf16.mxu1 %v425_v7  ;;  %v149_v49 = vld [vmem:[%s640_s3 + $0x30] sm:$0xff]  ;;  %v363_v51 = vpack.c.bf16 %v33_v45, %v32_v44  ;;  %v427_v12 = vmov 0.0  }
  0x11   :  { %356 = vmatpush3.bf16.msra.mxu0 %v355_v31  ;;  %v150_v50 = vld [vmem:[%s640_s3 + $0x38] sm:$0xff]  ;;  %v365_v52 = vpack.c.bf16 %v51_v47, %v50_v46  ;;  %v34_v53 = vld [vmem:[%s638_s1 + $0x60] sm:$0xff]  ;;  %v35_v54 = vld [vmem:[%s638_s1 + $0x68] sm:$0xff]  ;;  %338 = vmatprep.mubr.msk.f32.mxu1 %vm426_vm0, %v427_v12 }
  0x12   :  { %358 = vmatprep.subr.bf16.mxu0 %v357_v34  ;;  %v52_v55 = vld [vmem:[%s638_s1 + $0xf0] sm:$0xff]  ;;  %v53_v56 = vld [vmem:[%s638_s1 + $0xf8] sm:$0xff]  ;;  %v383_v57 = vpack.c.bf16 %v150_v50, %v149_v49  ;;  %v151_v58 = vld [vmem:[%s640_s3 + $0x40] sm:$0xff]  ;;  %v367_v60 = vpack.c.bf16 %v35_v54, %v34_v53 }
  0x13   :  { %381 = vmatpush3.bf16.msra.mxu1 %v380_v48  ;;  %v152_v59 = vld [vmem:[%s640_s3 + $0x48] sm:$0xff]  ;;  %v369_v61 = vpack.c.bf16 %v53_v56, %v52_v55  ;;  %v36_v62 = vld [vmem:[%s638_s1 + $0x70] sm:$0xff]  ;;  %v37_v63 = vld [vmem:[%s638_s1 + $0x78] sm:$0xff] }
  0x14   :  { %382 = vmatprep.subr.bf16.mxu1 %v425_v7  ;;  %v386_v0 = vpack.c.bf16 %v152_v59, %v151_v58  ;;  %v153_v1 = vld [vmem:[%s640_s3 + $0x50] sm:$0xff]  ;;  %v154_v2 = vld [vmem:[%s640_s3 + $0x58] sm:$0xff]  ;;  %v371_v3 = vpack.c.bf16 %v37_v63, %v36_v62  ;;  %v155_v5 = vld [vmem:[%s640_s3 + $0x60] sm:$0xff] }
  0x15   :  { %360 = vmatpush3.bf16.msra.mxu0 %v359_v42  ;;  %v389_v4 = vpack.c.bf16 %v154_v2, %v153_v1  ;;  %v156_v6 = vld [vmem:[%s640_s3 + $0x68] sm:$0xff]  ;;  %v157_v9 = vld [vmem:[%s640_s3 + $0x70] sm:$0xff]  ;;  %v158_v10 = vld [vmem:[%s640_s3 + $0x78] sm:$0xff]  ;;  %s428_s3 = smov [#allocation2]  }
  0x16   :  { %362 = vmatprep.subr.bf16.mxu0 %v361_v43  ;;  %v392_v8 = vpack.c.bf16 %v156_v6, %v155_v5  ;;  %v395_v11 = vpack.c.bf16 %v158_v10, %v157_v9  ;;  %v251_v14 = vld [vmem:[%s639_s2] ss:$0 sm:$0xff]  ;;  %s243_s16 = sshll.u32 %s428_s3, 4  ;;  %s244_s16 = int_to_ptr.vmem [resolvable:$true] %s243_s16 }
  0x17   :  { %384 = vmatpush3.bf16.msra.mxu1 %v383_v57  ;;  %v253_v18 = vld [vmem:[%s641_s4] ss:$0 sm:$0xff]  ;;  %s401_s17 = scalar_lea.vmem %s244_s16, 32  ;;  %p406_p1 = scmp.lt.s32.totalorder %s244_s16, %s244_s16 }
  0x18   :  { %385 = vmatprep.subr.bf16.mxu1 %v425_v7  ;;  %p402_p0 = scmp.ne.s32.totalorder %s244_s16, %s401_s17  ;;  %p407_p2 = scmp.lt.s32.totalorder %s401_s17, %s401_s17 }
  0x19   :  { %364 = vmatpush3.bf16.msra.mxu0 %v363_v51 }
  0x1a   :  { %366 = vmatprep.subr.bf16.mxu0 %v365_v52  ;;  %p408_p3 = por %p407_p2, %p406_p1 }
  0x1b   :  { %387 = vmatpush3.bf16.msra.mxu1 %v386_v0 }
  0x1c   :  { %388 = vmatprep.subr.bf16.mxu1 %v425_v7  ;;  %p409_p4 = pnand %p408_p3, %p402_p0 }
  0x1d   :  { %368 = vmatpush3.bf16.msra.mxu0 %v367_v60 }
  0x1e   :  { %370 = vmatprep.subr.bf16.mxu0 %v369_v61 }
  0x1f   :  { %390 = vmatpush3.bf16.msra.mxu1 %v389_v4 }
  0x20   :  { %391 = vmatprep.subr.bf16.mxu1 %v425_v7 }
  0x21   :  { %372 = vmatpush3.bf16.msra.mxu0 %v371_v3 }
  0x23   :  { %393 = vmatpush3.bf16.msra.mxu1 %v392_v8 }
  0x24   :  { %137 = vmatmul.mubr.f32.vlgmr.msra.gmra.mrb[0].mxu0 %v517_v26  ;;  %394 = vmatprep.subr.bf16.mxu1 %v425_v7 }
  0x27   :  { %396 = vmatpush3.bf16.msra.mxu1 %v395_v11 }
  0xf7   :  { %v286_v13 = vpop.f32.mrb[0].mxu0 }
  0xf8   :  { %v287_v15 = vpop.f32.mrb[1].mxu0 }
  0xf9   :  { %v288_v7 = vadd.f32 %v287_v15, %v286_v13 }
  0xfb   :  { %v139_v16 = vadd.f32 %v288_v7, %v251_v14 }
  0xfd   :  { %v142_v17 = vmax.f32 %v139_v16, 0.0 }
  0xff   :  { %339 = vmatmul.mubr.f32.vlgmr.msra.gmra.mrb[0].mxu1 %v142_v17 }
 0x1d2   :  { %v232_v19 = vpop.f32.mrb[0].mxu1 }
 0x1d3   :  { %v233_v20 = vadd.f32 %v253_v18, %v232_v19  ;;  %v340_v21 = vpop.f32.mrb[1].mxu1 }
 0x1d5   :  { %236 = vst [vmem:[#allocation2] sm:$0x3] %v233_v20 }
 0x1d6   :  { %412 = shalt.err (!%p409_p4)
}
 0x1d7   :  { %s413_s19 = scalar_lea.hbm %s642_s5, 32 }
 0x1d8   :  { %p414_p5 = scmp.ne.s32.totalorder %s642_s5, %s413_s19  ;;  %p417_p6 = scmp.lt.u32.totalorder %s413_s19, %s642_s5 }
 0x1da   :  { %p419_p7 = pnand %p417_p6, %p414_p5 }
 0x1dc   :  { %422 = shalt.err (!%p419_p7)
}
 0x1dd   :  { %246 = dma.vmem_to_hbm [thread:$0]  %s244_s16, 32, %s642_s5, [#allocation3]  }
 0x1de   :  { %423 = dma.done.wait [#allocation3], 32  }
 0x1df   :  { %424 = vsyncadd [#allocation3], 4294967264 }
 0x1e0   :  { %250 = vsyncpa [#allocation3], 1 }

</bundles_post_ra>
